<compile_context>
chip_gen: v7x
topology: tpu7x:2x2x1
jax: 0.10.0
libtpu: 0.0.40
codegen_flags: <defaults>
</compile_context>

<pallas_src>
import functools

import jax
import jax.numpy as jnp
import numpy as np
from jax.experimental import pallas as pl
from jax.experimental.pallas import tpu as pltpu

EPS = 1e-8

_LANE = 128
_MAX_FUSED_ELEMS = 1 << 19   # B*N elems handled by the single fused grid step (~2 MiB f32)
_MAX_TILE_ELEMS = 1 << 16    # 64K elems per (B, TILE) tile column in the tiled path


def _round_up(v, m):
    return ((v + m - 1) // m) * m


def _vmem_limit(block_bytes):
    # ~4x block bytes live (in + out, double-buffered) plus headroom; clamp so it
    # is always legal on v7x's 64 MiB physical VMEM.
    return int(min(64 * 1024 * 1024, max(32 * 1024 * 1024, 8 * block_bytes)))


# --------------------------------------------------------------------------
# Fused path: whole (B, N) block resident, single grid step.
# --------------------------------------------------------------------------
def _cumln_fused_kernel(alpha_ref, prev_mean_ref, x_ref, y_ref, new_mean_ref):
    # alpha_ref:     SMEM (1,)   f32 -- step / (step + 1)
    # prev_mean_ref: VMEM (B, 1) f32 -- running mean per batch row
    # x_ref, y_ref:  VMEM (B, N)     -- lane-dense flattened input / output
    # new_mean_ref:  VMEM (B, 1) f32 -- updated running mean
    x = x_ref[...].astype(jnp.float32)
    inv_n = 1.0 / float(x.shape[-1])                       # static
    cur_mean = jnp.sum(x, axis=-1, keepdims=True) * inv_n  # (B, 1), XLU reduction

    alpha = alpha_ref[0]
    new_mean = alpha * prev_mean_ref[...] + (1.0 - alpha) * cur_mean
    new_mean_ref[...] = new_mean

    # Exact reciprocal on (B,1) only (tiny), then a broadcast multiply per vreg.
    inv = 1.0 / (new_mean + EPS)
    y_ref[...] = (x * inv).astype(y_ref.dtype)


def _fused_step(x2d, prev_mean, alpha):
    B, N = x2d.shape
    vmem_limit = _vmem_limit(B * N * 4)
    return pl.pallas_call(
        _cumln_fused_kernel,
        out_shape=(
            jax.ShapeDtypeStruct((B, N), x2d.dtype),
            jax.ShapeDtypeStruct((B, 1), jnp.float32),
        ),
        grid=(1,),
        in_specs=[
            pl.BlockSpec(memory_space=pltpu.SMEM),          # alpha
            pl.BlockSpec((B, 1), lambda i: (0, 0)),         # prev_mean
            pl.BlockSpec((B, N), lambda i: (0, 0)),         # x (lane-dense)
        ],
        out_specs=(
            pl.BlockSpec((B, N), lambda i: (0, 0)),         # y (lane-dense)
            pl.BlockSpec((B, 1), lambda i: (0, 0)),         # new_mean
        ),
        compiler_params=pltpu.CompilerParams(
            dimension_semantics=("arbitrary",),
            vmem_limit_bytes=vmem_limit),
    )(alpha, prev_mean, x2d)


# --------------------------------------------------------------------------
# Tiled path: bounded (B, TILE) tiles, two passes (row-sum reduce, then scale).
# --------------------------------------------------------------------------
def _row_sum_kernel(x_ref, sum_ref):
    # x_ref: (B, TILE)   sum_ref: (B, 1) f32 accumulator resident across tiles
    t = pl.program_id(0)

    @pl.when(t == 0)
    def _():
        sum_ref[...] = jnp.zeros_like(sum_ref)

    sum_ref[...] += jnp.sum(x_ref[...].astype(jnp.float32), axis=-1, keepdims=True)


def _scale_kernel(inv_ref, x_ref, y_ref):
    # inv_ref: (B, 1) f32   x_ref/y_ref: (B, TILE)
    y_ref[...] = (x_ref[...].astype(jnp.float32) * inv_ref[...]).astype(y_ref.dtype)


def _tiled_step(x2d, prev_mean, alpha, *, tile=None):
    B, N = x2d.shape
    if tile is None:
        tile = min(_MAX_TILE_ELEMS, _round_up(N, _LANE))
    tile = _round_up(int(tile), _LANE)
    n_pad = _round_up(N, tile)
    x_pad = jnp.pad(x2d, ((0, 0), (0, n_pad - N))) if n_pad != N else x2d
    num_tiles = n_pad // tile
    vmem_limit = _vmem_limit(B * tile * 4)

    # Pass 1: per-row partial sums accumulated across tiles (zero padding is inert).
    sums = pl.pallas_call(
        _row_sum_kernel,
        out_shape=jax.ShapeDtypeStruct((B, 1), jnp.float32),
        grid=(num_tiles,),
        in_specs=[pl.BlockSpec((B, tile), lambda t: (0, t))],
        out_specs=pl.BlockSpec((B, 1), lambda t: (0, 0)),
        compiler_params=pltpu.CompilerParams(
            dimension_semantics=("arbitrary",),
            vmem_limit_bytes=vmem_limit),
    )(x_pad)

    # Running-mean update + exact reciprocal: B scalars, done in glue.
    cur_mean = sums * (1.0 / N)
    a = alpha[0]
    new_mean = a * prev_mean + (1.0 - a) * cur_mean
    inv = 1.0 / (new_mean + EPS)

    # Pass 2: lane-dense broadcast multiply; fully parallel grid axis.
    y_pad = pl.pallas_call(
        _scale_kernel,
        out_shape=jax.ShapeDtypeStruct((B, n_pad), x2d.dtype),
        grid=(num_tiles,),
        in_specs=[
            pl.BlockSpec((B, 1), lambda t: (0, 0)),      # inv (resident)
            pl.BlockSpec((B, tile), lambda t: (0, t)),   # x tile
        ],
        out_specs=pl.BlockSpec((B, tile), lambda t: (0, t)),
        compiler_params=pltpu.CompilerParams(
            dimension_semantics=("parallel",),
            vmem_limit_bytes=vmem_limit),
    )(inv, x_pad)

    return y_pad[:, :N], new_mean


# --------------------------------------------------------------------------
# Functional step + stateful wrapper
# --------------------------------------------------------------------------
@functools.partial(jax.jit, static_argnames=("force_tiled", "tile"))
def cum_layer_norm_step(x2d, prev_mean, alpha, *, force_tiled=False, tile=None):
    """One forward call. x2d: (B, N) flattened input. Returns (y2d, new_mean)."""
    B, N = x2d.shape
    if (not force_tiled) and B * N <= _MAX_FUSED_ELEMS:
        return _fused_step(x2d, prev_mean, alpha)
    return _tiled_step(x2d, prev_mean, alpha, tile=tile)


class CumLayerNorm:
    """Stateful wrapper mirroring the PyTorch module (state lives in Python/JAX glue)."""

    def __init__(self):
        self.mean = None   # (B, 1) f32 running mean per batch element
        self.step = 0

    def __call__(self, x):
        # torch.mean over all non-batch axes (dims (1,2,3) or (1,2)) == flatten + row mean.
        orig_shape = x.shape
        B = x.shape[0]
        x2d = x.reshape(B, -1)                      # lane-dense layout (free reshape)
        prev = self.mean if self.mean is not None else jnp.zeros((B, 1), jnp.float32)
        # step == 0 -> alpha == 0 -> new_mean == current mean, matching the
        # `self.mean is None` branch of the PyTorch module exactly.
        alpha = jnp.asarray([self.step / (self.step + 1.0)], dtype=jnp.float32)
        y2d, new_mean = cum_layer_norm_step(x2d, prev, alpha)
        self.mean = new_mean
        self.step = min(self.step + 1, 80)
        return y2d.reshape(orig_shape)

    def reset(self):
        self.mean = None
        self.step = 0


# --------------------------------------------------------------------------
# Pure-JAX reference (matches PyTorch semantics) + self-test
# --------------------------------------------------------------------------
def _reference_step(x, prev_mean, step):
    axes = tuple(range(1, x.ndim))
    mean = jnp.mean(x, axis=axes, keepdims=True)
    if prev_mean is None:
        new_mean = mean
    else:
        alpha = step / (step + 1.0)
        new_mean = alpha * prev_mean + (1.0 - alpha) * mean
    return x / (new_mean + EPS), new_mean


if __name__ == "__main__":
    key = jax.random.PRNGKey(0)
    B, C, H, W = 2, 4, 16, 16
    k1, k2, k3 = jax.random.split(key, 3)
    x1 = jax.random.uniform(k1, (B, C, H, W), jnp.float32) + 0.5
    x2 = jax.random.uniform(k2, (B, C, H, W), jnp.float32) + 0.5

    # --- fused path through the stateful wrapper (two calls: alpha=0 then alpha=0.5)
    ln = CumLayerNorm()
    y1 = ln(x1)
    y2 = ln(x2)
    jax.block_until_ready(y2)

    r1, m1 = _reference_step(x1, None, 0)
    r2, m2 = _reference_step(x2, m1, 1)
    np.testing.assert_allclose(np.asarray(y1), np.asarray(r1), rtol=1e-5, atol=1e-5)
    np.testing.assert_allclose(np.asarray(y2), np.asarray(r2), rtol=1e-5, atol=1e-5)

    # --- also exercise the tiled (large-N) path: awkward N=600, TILE=256 (pads to 768)
    x3 = jax.random.uniform(k3, (2, 3, 10, 20), jnp.float32) + 0.5
    prev0 = jnp.zeros((2, 1), jnp.float32)
    alpha0 = jnp.asarray([0.0], dtype=jnp.float32)
    y3, m3 = cum_layer_norm_step(x3.reshape(2, -1), prev0, alpha0,
                                 force_tiled=True, tile=256)
    jax.block_until_ready(y3)
    r3, _ = _reference_step(x3, None, 0)
    np.testing.assert_allclose(np.asarray(y3).reshape(x3.shape), np.asarray(r3),
                               rtol=1e-5, atol=1e-5)

    print("KERNEL_OK")
</pallas_src>

<mosaic_0001>
module attributes {stable_mosaic.version = 11 : i64} {
  func.func @_cumln_fused_kernel(%arg0: i32, %arg1: memref<1xf32, #tpu.memory_space<smem>>, %arg2: memref<2x1xf32, #tpu.memory_space<vmem>>, %arg3: memref<2x1024xf32, #tpu.memory_space<vmem>>, %arg4: memref<2x1024xf32, #tpu.memory_space<vmem>>, %arg5: memref<2x1xf32, #tpu.memory_space<vmem>>) attributes {dimension_semantics = [#tpu.dimension_semantics<arbitrary>], iteration_bounds = array<i64: 1>, scalar_prefetch = 0 : i64, scratch_operands = 0 : i64, tpu.core_type = #tpu.core_type<tc>, window_params = [{transform_indices = @transform_0, window_bounds = array<i64: 1>}, {pipeline_mode = #tpu.pipeline_mode<synchronous>, transform_indices = @transform_1, window_bounds = array<i64: 2, 1>}, {pipeline_mode = #tpu.pipeline_mode<synchronous>, transform_indices = @transform_2, window_bounds = array<i64: 2, 1024>}, {pipeline_mode = #tpu.pipeline_mode<synchronous>, transform_indices = @transform_3, window_bounds = array<i64: 2, 1024>}, {pipeline_mode = #tpu.pipeline_mode<synchronous>, transform_indices = @transform_4, window_bounds = array<i64: 2, 1>}]} {
    %c0 = arith.constant 0 : index
    %c0_0 = arith.constant 0 : index
    %0 = vector.load %arg3[%c0, %c0_0] : memref<2x1024xf32, #tpu.memory_space<vmem>>, vector<2x1024xf32>
    %cst = arith.constant dense<0.000000e+00> : vector<2xf32>
    %1 = vector.multi_reduction <add>, %0, %cst [1] : vector<2x1024xf32> to vector<2xf32>
    %2 = vector.shape_cast %1 : vector<2xf32> to vector<2x1xf32>
    %cst_1 = arith.constant 9.765625E-4 : f32
    %3 = vector.broadcast %cst_1 : f32 to vector<2x1xf32>
    %4 = arith.mulf %2, %3 : vector<2x1xf32>
    %c0_2 = arith.constant 0 : index
    %5 = memref.load %arg1[%c0_2] : memref<1xf32, #tpu.memory_space<smem>>
    %c0_3 = arith.constant 0 : index
    %c0_4 = arith.constant 0 : index
    %6 = vector.load %arg2[%c0_3, %c0_4] : memref<2x1xf32, #tpu.memory_space<vmem>>, vector<2x1xf32>
    %7 = vector.broadcast %5 : f32 to vector<2x1xf32>
    %8 = arith.mulf %7, %6 : vector<2x1xf32>
    %cst_5 = arith.constant 1.000000e+00 : f32
    %9 = arith.subf %cst_5, %5 : f32
    %10 = vector.broadcast %9 : f32 to vector<2x1xf32>
    %11 = arith.mulf %10, %4 : vector<2x1xf32>
    %12 = arith.addf %8, %11 : vector<2x1xf32>
    %c0_6 = arith.constant 0 : index
    %c0_7 = arith.constant 0 : index
    %13 = vector.load %arg5[%c0_6, %c0_7] : memref<2x1xf32, #tpu.memory_space<vmem>>, vector<2x1xf32>
    tpu.vector_store %arg5[%c0_6, %c0_7], %12 {strides = array<i32>} : memref<2x1xf32, #tpu.memory_space<vmem>>, vector<2x1xf32>,
    %cst_8 = arith.constant 9.99999993E-9 : f32
    %14 = vector.broadcast %cst_8 : f32 to vector<2x1xf32>
    %15 = arith.addf %12, %14 : vector<2x1xf32>
    %cst_9 = arith.constant 1.000000e+00 : f32
    %16 = vector.broadcast %cst_9 : f32 to vector<2x1xf32>
    %17 = arith.divf %16, %15 : vector<2x1xf32>
    %18 = vector.broadcast %17 : vector<2x1xf32> to vector<2x1024xf32>
    %19 = arith.mulf %0, %18 : vector<2x1024xf32>
    %c0_10 = arith.constant 0 : index
    %c0_11 = arith.constant 0 : index
    %20 = vector.load %arg4[%c0_10, %c0_11] : memref<2x1024xf32, #tpu.memory_space<vmem>>, vector<2x1024xf32>
    tpu.vector_store %arg4[%c0_10, %c0_11], %19 {strides = array<i32>} : memref<2x1024xf32, #tpu.memory_space<vmem>>, vector<2x1024xf32>,
    return
  }
  func.func @transform_0(%arg0: i32) -> i32 {
    %c0_i32 = arith.constant 0 : i32
    %c0_i32_0 = arith.constant 0 : i32
    return %c0_i32 : i32
  }
  func.func @transform_1(%arg0: i32) -> (i32, i32) {
    %c0_i32 = arith.constant 0 : i32
    %c0_i32_0 = arith.constant 0 : i32
    %c0_i32_1 = arith.constant 0 : i32
    return %c0_i32, %c0_i32_0 : i32, i32
  }
  func.func @transform_2(%arg0: i32) -> (i32, i32) {
    %c0_i32 = arith.constant 0 : i32
    %c0_i32_0 = arith.constant 0 : i32
    %c0_i32_1 = arith.constant 0 : i32
    return %c0_i32, %c0_i32_0 : i32, i32
  }
  func.func @transform_3(%arg0: i32) -> (i32, i32) {
    %c0_i32 = arith.constant 0 : i32
    %c0_i32_0 = arith.constant 0 : i32
    %c0_i32_1 = arith.constant 0 : i32
    return %c0_i32, %c0_i32_0 : i32, i32
  }
  func.func @transform_4(%arg0: i32) -> (i32, i32) {
    %c0_i32 = arith.constant 0 : i32
    %c0_i32_0 = arith.constant 0 : i32
    %c0_i32_1 = arith.constant 0 : i32
    return %c0_i32, %c0_i32_0 : i32, i32
  }
}

</mosaic_0001>

<bundles_post_ra>
// kernel: cum_layer_norm_step.1
= control target key start
LH: loop header
LB: loop body
LE: loop exit
PB: predicated region body
PF: predicated region fallthrough
CT: control target
= control target key end

     0   :  { %11 = vsyncpa [#allocation4], 0  ;;  %s275_s0 = inlined_call_operand.<no memory space> [shape: f32[1], index: 0, kind: input, shape index: {}]   ;;  %s276_s1 = inlined_call_operand.vmem [shape: f32[2,1], index: 1, kind: input, shape index: {}]   ;;  %s277_s2 = inlined_call_operand.hbm [shape: f32[2,1024], index: 2, kind: input, shape index: {}]   ;;  %s278_s3 = inlined_call_operand.hbm [shape: f32[2,1024], index: 3, kind: output, shape index: {0}]   ;;  %s279_s4 = inlined_call_operand.vmem [shape: f32[2,1], index: 4, kind: output, shape index: {1}]  }
   0x1   :  { %12 = vsyncpa [#allocation5], 0  ;;  %s201_s15 = smov [#allocation3]   ;;  %s153_s19 = scalar_lea.hbm %s277_s2, 256 }
   0x2   :  { %s23_s16 = sshll.u32 %s201_s15, 4  ;;  %p154_p0 = scmp.ne.s32.totalorder %s277_s2, %s153_s19  ;;  %s24_s16 = int_to_ptr.vmem [resolvable:$true] %s23_s16 }
   0x3   :  { %p157_p1 = scmp.lt.u32.totalorder %s153_s19, %s277_s2 }
   0x5   :  { %p159_p2 = pnand %p157_p1, %p154_p0 }
   0x7   :  { %162 = shalt.err (!%p159_p2)
}
   0x8   :  { %s163_s24 = scalar_lea.vmem %s24_s16, 256  ;;  %p168_p4 = scmp.lt.s32.totalorder %s24_s16, %s24_s16 }
   0x9   :  { %p164_p3 = scmp.ne.s32.totalorder %s24_s16, %s163_s24  ;;  %p169_p5 = scmp.lt.s32.totalorder %s163_s24, %s163_s24 }
   0xb   :  { %p170_p6 = por %p169_p5, %p168_p4 }
   0xd   :  { %p171_p7 = pnand %p170_p6, %p164_p3 }
   0xf   :  { %174 = shalt.err (!%p171_p7)
}
  0x10   :  { %26 = dma.hbm_to_vmem [thread:$0]  %s277_s2, 256, %s24_s16, [#allocation4]  }
  0x11   :  { %197 = dma.done.wait [#allocation4], 256  }
  0x12   :  { %198 = vsyncadd [#allocation4], 4294967040  ;;  %v38_v0 = vlaneseq  ;;  %v202_v1 = vmov 1983009808   ;;  %v30_v6 = vld [vmem:[#allocation3] sm:$0xff]  ;;  %v31_v7 = vld [vmem:[#allocation3 + $0x8] sm:$0xff]  ;;  %v97_v35 = vstv %s275_s0 }
  0x13   :  { %v36_v2 = vunpack.c.l.s4 %v202_v1  ;;  %v34_v8 = vcombine.high %v30_v6, %v30_v6  ;;  %vm76_vm0 = vcmask 1041408   ;;  %v51_v12 = vcombine.high %v31_v7, %v31_v7  ;;  %s99_s28 = ssub.f32 1.0, %s275_s0  ;;  %v96_v34 = vld [vmem:[%s276_s1] sm:$0x3]  ;;  %s205_s0 = smov [#allocation6]  }
  0x14   :  { %v39_v3 = vshrl.u32 %v38_v0, 7  ;;  %v203_v33 = vmov 0   ;;  %v98_v38 = vmul.f32 %v97_v35, %v96_v34  ;;  %vm103_vm1 = vcmask 1024   ;;  %s130_s1 = sshll.u32 %s205_s0, 4  ;;  %s131_s1 = int_to_ptr.vmem [resolvable:$true] %s130_s1 }
  0x15   :  { %v37_v4 = vunpack.c.0.s8 %v36_v2  ;;  %148 = vset.pattern.permute.xlu0 %v203_v33  ;;  %v100_v36 = vstv %s99_s28  ;;  %v204_v44 = vmov 269488144   ;;  %s175_s9 = scalar_lea.vmem %s131_s1, 256  ;;  %p180_p9 = scmp.lt.s32.totalorder %s131_s1, %s131_s1 }
  0x16   :  { %v113_v45 = vunpack.c.l.s4 %v204_v44  ;;  %p176_p8 = scmp.ne.s32.totalorder %s131_s1, %s175_s9  ;;  %p181_p10 = scmp.lt.s32.totalorder %s175_s9, %s175_s9 }
  0x17   :  { %v40_v5 = vsub.s32 %v37_v4, %v39_v3 }
  0x18   :  { %v114_v46 = vunpack.c.0.s8 %v113_v45  ;;  %p182_p11 = por %p181_p10, %p180_p9 }
  0x19   :  { %v41_v9 = vrot.slane %v30_v6, %v40_v5  ;;  %v48_v10 = vrot.slane %v34_v8, %v40_v5  ;;  %v58_v13 = vrot.slane %v31_v7, %v40_v5  ;;  %v65_v19 = vrot.slane %v51_v12, %v40_v5 }
  0x1a   :  { %v117_v47 = vsub.s32 %v114_v46, %v39_v3  ;;  %p183_p12 = pnand %p182_p11, %p176_p8 }
  0x1b   :  { %v49_v11 = vcombine.high %v41_v9, %v41_v9  ;;  %v77_v14 = vsel %vm76_vm0, %v41_v9, 0.0  ;;  %v50_v15 = vcombine.high %v48_v10, %v48_v10  ;;  %v80_v17 = vsel %vm76_vm0, %v48_v10, 0.0 }
  0x1c   :  { %v66_v20 = vcombine.high %v58_v13, %v58_v13  ;;  %v84_v23 = vsel %vm76_vm0, %v58_v13, 0.0  ;;  %v67_v25 = vcombine.high %v65_v19, %v65_v19  ;;  %v88_v28 = vsel %vm76_vm0, %v65_v19, 0.0 }
  0x1d   :  { %v78_v16 = vsel %vm76_vm0, %v49_v11, 0.0  ;;  %v82_v21 = vsel %vm76_vm0, %v50_v15, 0.0 }
  0x1e   :  { %v79_v18 = vadd.f32 %v78_v16, %v77_v14  ;;  %v86_v26 = vsel %vm76_vm0, %v66_v20, 0.0  ;;  %v90_v30 = vsel %vm76_vm0, %v67_v25, 0.0 }
  0x20   :  { %v81_v22 = vadd.f32 %v80_v17, %v79_v18 }
  0x22   :  { %v83_v24 = vadd.f32 %v82_v21, %v81_v22 }
  0x24   :  { %v85_v27 = vadd.f32 %v84_v23, %v83_v24 }
  0x26   :  { %v87_v29 = vadd.f32 %v86_v26, %v85_v27 }
  0x28   :  { %v89_v31 = vadd.f32 %v88_v28, %v87_v29 }
  0x2a   :  { %v91_v32 = vadd.f32 %v90_v30, %v89_v31 }
  0x2c   :  { %92 = vadd.xlane.f32.xlu0 %v91_v32 }
  0xb9   :  { %v93_v37 = vpop.xlane.xlu0 %92 }
  0xba   :  { %v94_v39 = vmul.f32 0.0009765625, %v93_v37 }
  0xbc   :  { %v101_v40 = vmul.f32 %v100_v36, %v94_v39 }
  0xbe   :  { %v102_v41 = vadd.f32 %v101_v40, %v98_v38 }
  0xc0   :  { %104 = vst.msk [vmem:[%s279_s4] sm:$0x3] %vm103_vm1, %v102_v41  ;;  %v105_v42 = vadd.f32 1e-08, %v102_v41 }
  0xc2   :  { %151 = vrcp.f32 %v105_v42 }
  0xcc   :  { %v152_v43 = vpop.eup %151 }
  0xcd   :  { %110 = vperm.xlu0 %148, %v152_v43  }
 0x14c   :  { %v111_v48 = vpop.permute.xlu0 %110 }
 0x14d   :  { %v118_v49 = vrot.slane %v111_v48, %v117_v47 }
 0x14f   :  { %v120_v50 = vmul.f32 %v118_v49, %v30_v6  ;;  %v121_v51 = vmul.f32 %v118_v49, %v31_v7 }
 0x151   :  { %122 = vst [vmem:[#allocation6] sm:$0xff] %v120_v50  ;;  %123 = vst [vmem:[#allocation6 + $0x8] sm:$0xff] %v121_v51 }
 0x152   :  { %186 = shalt.err (!%p183_p12)
}
 0x153   :  { %s187_s11 = scalar_lea.hbm %s278_s3, 256 }
 0x154   :  { %p188_p13 = scmp.ne.s32.totalorder %s278_s3, %s187_s11  ;;  %p191_p0 = scmp.lt.u32.totalorder %s187_s11, %s278_s3 }
 0x156   :  { %p193_p1 = pnand %p191_p0, %p188_p13 }
 0x158   :  { %196 = shalt.err (!%p193_p1)
}
 0x159   :  { %133 = dma.vmem_to_hbm [thread:$0]  %s131_s1, 256, %s278_s3, [#allocation5]  }
 0x15a   :  { %199 = dma.done.wait [#allocation5], 256  }
 0x15b   :  { %200 = vsyncadd [#allocation5], 4294967040 }
 0x15c   :  { %141 = vsyncpa [#allocation4], 1 }
 0x15d   :  { %142 = vsyncpa [#allocation5], 1 }

</bundles_post_ra>
